<compile_context>
chip_gen: v7x
topology: tpu7x:2x2x1
jax: 0.10.0
libtpu: 0.0.40
codegen_flags: <defaults>
</compile_context>

<pallas_src>
import functools

import jax
import jax.numpy as jnp
from jax.experimental import pallas as pl
from jax.experimental.pallas import tpu as pltpu


_K_ALIGN = 512                        # K padding alignment (decoupled from tk)
_LANE = 128                           # lane width: last block dims must divide
_VMEM_SAFE_CAP = 56 * 1024 * 1024     # stay inside the 64 MiB/TC VMEM of v7x


def _round_up(x, m):
    return ((x + m - 1) // m) * m


def prepare_linear_params(weight, bias, *, weight_dtype=jnp.bfloat16, tn=None):
    """One-time weight layout (hoisted out of the per-call hot path).

    weight: (N, K) in PyTorch nn.Linear convention.
    Returns:
      wt_blocked: (NB, Kp, tn) -- W^T transposed, zero-padded (K -> Kp multiple
                  of 512, N -> Np multiple of 128), cast to `weight_dtype`
                  (bf16 by default) and pre-blocked along N so each (tk, tn)
                  weight tile is one contiguous HBM slab.
      b_p:        (1, Np) float32 bias.
    """
    N, K = weight.shape
    Kp = _round_up(K, _K_ALIGN)
    Np = _round_up(N, _LANE)                  # lane-dense output (1000 -> 1024)
    if tn is None:
        tn = 512 if Np % 512 == 0 else Np     # 2 N blocks -> both TCs on v7x
    tn = min(tn, Np)
    if Np % tn != 0:
        tn = Np
    NB = Np // tn

    wt = jnp.pad(weight.T.astype(weight_dtype), ((0, Kp - K), (0, Np - N)))
    wt_blocked = wt.reshape(Kp, NB, tn).transpose(1, 0, 2)     # (NB, Kp, tn)
    b_p = jnp.pad(bias.astype(jnp.float32), (0, Np - N)).reshape(1, Np)
    return wt_blocked, b_p


def _linear_kernel(x_ref, wt_ref, b_ref, o_ref):
    """Grid = (N blocks [parallel across TCs], K blocks [inner reduction]).

    The f32 output block stays resident in VMEM across the K axis; bias is
    written at k == 0 and matmul partials accumulate directly into it.
    """
    k = pl.program_id(1)

    @pl.when(k == 0)
    def _():
        o_ref[...] = jnp.broadcast_to(b_ref[...], o_ref.shape)

    o_ref[...] += jnp.dot(
        x_ref[...], wt_ref[...], preferred_element_type=jnp.float32
    )


@functools.partial(jax.jit, static_argnames=("out_features", "tk"))
def linear_pallas(x, wt_blocked, b_p, out_features, *, tk=None):
    """y = x @ W^T + b with pre-laid-out params (see prepare_linear_params).

    x:          (B, K) float32 (cast to wt_blocked.dtype for the matmul;
                accumulation is always f32 via preferred_element_type)
    wt_blocked: (NB, Kp, tn) pre-transposed / padded / pre-blocked weight
    b_p:        (1, Np) float32, with Np == NB * tn
    """
    B, K = x.shape
    NB, Kp, tn = wt_blocked.shape
    Np = NB * tn
    assert out_features <= Np, (out_features, Np)
    assert K <= Kp and Kp - K < _K_ALIGN, (K, Kp)
    assert b_p.shape == (1, Np), b_p.shape

    compute_dtype = wt_blocked.dtype
    itemsize = jnp.dtype(compute_dtype).itemsize

    # Runtime tk choice, decoupled from the stored weight layout: largest
    # multiple of _K_ALIGN that divides Kp and does not exceed the request.
    tk_request = tk if tk is not None else (8192 if itemsize <= 2 else 4096)
    units = Kp // _K_ALIGN
    t = max(1, min(max(tk_request // _K_ALIGN, 1), units))
    while units % t != 0:
        t -= 1
    tk = t * _K_ALIGN

    Mp = _round_up(max(B, 8), 8)

    # Cheap padding of the (tiny) activations only; zero rows/cols add nothing.
    x_p = jnp.pad(x.astype(compute_dtype), ((0, Mp - B), (0, Kp - K)))

    grid = (NB, Kp // tk)

    # VMEM budget: double-buffered x / weight / bias tiles + resident f32 out.
    vmem_needed = (
        2 * Mp * tk * itemsize        # x tile
        + 2 * tk * tn * itemsize      # weight tile
        + 2 * tn * 4                  # bias tile
        + 2 * Mp * tn * 4             # output tile (f32)
    )
    if int(vmem_needed * 1.2) > _VMEM_SAFE_CAP:
        raise ValueError(
            f"tile footprint {vmem_needed / 2**20:.1f} MiB (x1.2 headroom) "
            f"exceeds the safe VMEM cap {_VMEM_SAFE_CAP / 2**20:.0f} MiB; "
            f"reduce tk (={tk}) or tn (={tn})."
        )
    vmem_limit = int(
        min(_VMEM_SAFE_CAP, max(32 * 1024 * 1024, int(vmem_needed * 1.5)))
    )

    cost = pl.CostEstimate(
        flops=2 * Mp * Kp * Np,
        transcendentals=0,
        bytes_accessed=int(
            wt_blocked.size * itemsize       # weight streamed exactly once
            + x_p.size * itemsize * NB       # x re-read once per N block
            + Mp * Np * 4                    # output
            + Np * 4                         # bias
        ),
    )

    out = pl.pallas_call(
        _linear_kernel,
        out_shape=jax.ShapeDtypeStruct((Mp, Np), jnp.float32),
        grid_spec=pl.GridSpec(
            grid=grid,
            in_specs=[
                pl.BlockSpec((Mp, tk), lambda n, k: (0, k)),           # x
                pl.BlockSpec((None, tk, tn), lambda n, k: (n, k, 0)),  # weight slab
                pl.BlockSpec((1, tn), lambda n, k: (0, n)),            # bias
            ],
            out_specs=pl.BlockSpec((Mp, tn), lambda n, k: (0, n)),
        ),
        compiler_params=pltpu.CompilerParams(
            dimension_semantics=("parallel", "arbitrary"),   # N parallel, K reduce
            vmem_limit_bytes=vmem_limit,
        ),
        cost_estimate=cost,
    )(x_p, wt_blocked, b_p)

    return out[:B, :out_features]


def init_tt_params(key, in_features, out_features, dtype=jnp.float32):
    """Deterministic init matching nn.Linear's shapes (uniform +/- 1/sqrt(fan_in))."""
    kw, kb = jax.random.split(key)
    bound = 1.0 / jnp.sqrt(jnp.asarray(in_features, dtype))
    weight = jax.random.uniform(
        kw, (out_features, in_features), dtype, minval=-bound, maxval=bound
    )
    bias = jax.random.uniform(
        kb, (out_features,), dtype, minval=-bound, maxval=bound
    )
    return weight, bias


if __name__ == "__main__":
    # Scaled-down shapes consistent with the module's forward:
    # real module: B x 196608 -> B x 1000.  Here: B=2, K=3*16*16=768, N=1000.
    B = 2
    IN_FEATURES = 3 * 16 * 16   # 768 (stand-in for 196608 = 3*256*256)
    OUT_FEATURES = 1000

    key = jax.random.PRNGKey(0)
    kx, kp = jax.random.split(key)

    x = jax.random.normal(kx, (B, IN_FEATURES), jnp.float32)
    weight, bias = init_tt_params(kp, IN_FEATURES, OUT_FEATURES)

    # --- default bf16 weight-streaming path (halves HBM traffic vs f32) ---
    wt_bf16, b_bf16 = prepare_linear_params(weight, bias)   # bf16 by default
    y = jax.block_until_ready(linear_pallas(x, wt_bf16, b_bf16, OUT_FEATURES))
    y_ref_bf16 = (
        jnp.dot(
            x.astype(jnp.bfloat16),
            weight.T.astype(jnp.bfloat16),
            preferred_element_type=jnp.float32,
        )
        + bias
    )
    y_ref_f32 = x @ weight.T + bias
    assert y.shape == (B, OUT_FEATURES)
    assert jnp.allclose(y, y_ref_bf16, atol=5e-3, rtol=5e-3)
    assert jnp.allclose(y, y_ref_f32, atol=3e-2, rtol=3e-2)

    # --- exact f32 weight-streaming path (matches the f32 reference) ---
    wt_f32, b_f32 = prepare_linear_params(weight, bias, weight_dtype=jnp.float32)
    y32 = jax.block_until_ready(linear_pallas(x, wt_f32, b_f32, OUT_FEATURES))
    assert y32.shape == (B, OUT_FEATURES)
    assert jnp.allclose(y32, y_ref_f32, atol=1e-4, rtol=1e-4)

    print("KERNEL_OK")
</pallas_src>

<mosaic_0001>
module attributes {stable_mosaic.version = 11 : i64} {
  func.func @_linear_kernel(%arg0: i32, %arg1: i32, %arg2: memref<8x1024xbf16, #tpu.memory_space<vmem>>, %arg3: memref<1x1024x512xbf16, #tpu.memory_space<vmem>>, %arg4: memref<1x512xf32, #tpu.memory_space<vmem>>, %arg5: memref<8x512xf32, #tpu.memory_space<vmem>>) attributes {dimension_semantics = [#tpu.dimension_semantics<parallel>, #tpu.dimension_semantics<arbitrary>], iteration_bounds = array<i64: 2, 1>, scalar_prefetch = 0 : i64, scratch_operands = 0 : i64, tpu.core_type = #tpu.core_type<tc>, window_params = [{transform_indices = @transform_0, window_bounds = array<i64: 8, 1024>}, {transform_indices = @transform_1, window_bounds = array<i64: 1, 1024, 512>}, {transform_indices = @transform_2, window_bounds = array<i64: 1, 512>}, {transform_indices = @transform_3, window_bounds = array<i64: 8, 512>}]} {
    %c0_i32 = arith.constant 0 : i32
    %0 = arith.cmpi eq, %arg1, %c0_i32 : i32
    %1 = arith.extui %0 : i1 to i32
    %c0_i32_0 = arith.constant 0 : i32
    %2 = arith.cmpi ne, %1, %c0_i32_0 : i32
    scf.if %2 {
      %c0_9 = arith.constant 0 : index
      %c0_10 = arith.constant 0 : index
      %10 = vector.load %arg4[%c0_9, %c0_10] : memref<1x512xf32, #tpu.memory_space<vmem>>, vector<1x512xf32>
      %11 = vector.shape_cast %10 : vector<1x512xf32> to vector<1x512xf32>
      %12 = vector.broadcast %11 : vector<1x512xf32> to vector<8x512xf32>
      %c0_11 = arith.constant 0 : index
      %c0_12 = arith.constant 0 : index
      %13 = vector.load %arg5[%c0_11, %c0_12] : memref<8x512xf32, #tpu.memory_space<vmem>>, vector<8x512xf32>
      tpu.vector_store %arg5[%c0_11, %c0_12], %12 {strides = array<i32>} : memref<8x512xf32, #tpu.memory_space<vmem>>, vector<8x512xf32>,
    } else {
    }
    %c0 = arith.constant 0 : index
    %c0_1 = arith.constant 0 : index
    %3 = vector.load %arg5[%c0, %c0_1] : memref<8x512xf32, #tpu.memory_space<vmem>>, vector<8x512xf32>
    %c0_2 = arith.constant 0 : index
    %c0_3 = arith.constant 0 : index
    %4 = vector.load %arg2[%c0_2, %c0_3] : memref<8x1024xbf16, #tpu.memory_space<vmem>>, vector<8x1024xbf16>
    %c0_4 = arith.constant 0 : index
    %c0_5 = arith.constant 0 : index
    %c0_6 = arith.constant 0 : index
    %5 = vector.load %arg3[%c0_4, %c0_5, %c0_6] : memref<1x1024x512xbf16, #tpu.memory_space<vmem>>, vector<1x1024x512xbf16>
    %6 = vector.shape_cast %5 : vector<1x1024x512xbf16> to vector<1024x512xbf16>
    %cst = arith.constant dense<0.000000e+00> : vector<8x512xf32>
    %7 = tpu.matmul %4, %6, %cst {dimension_numbers = #tpu.dot_dimension_numbers<[1], [0], [0], [1], [0, 0, 1, 1], [], []>} : vector<8x1024xbf16>, vector<1024x512xbf16>, vector<8x512xf32> -> vector<8x512xf32>
    %8 = arith.addf %3, %7 : vector<8x512xf32>
    %c0_7 = arith.constant 0 : index
    %c0_8 = arith.constant 0 : index
    %9 = vector.load %arg5[%c0_7, %c0_8] : memref<8x512xf32, #tpu.memory_space<vmem>>, vector<8x512xf32>
    tpu.vector_store %arg5[%c0_7, %c0_8], %8 {strides = array<i32>} : memref<8x512xf32, #tpu.memory_space<vmem>>, vector<8x512xf32>,
    return
  }
  func.func @transform_0(%arg0: i32, %arg1: i32) -> (i32, i32) {
    %c0_i32 = arith.constant 0 : i32
    %c0_i32_0 = arith.constant 0 : i32
    return %c0_i32, %arg1 : i32, i32
  }
  func.func @transform_1(%arg0: i32, %arg1: i32) -> (i32, i32, i32) {
    %c0_i32 = arith.constant 0 : i32
    %c0_i32_0 = arith.constant 0 : i32
    return %arg0, %arg1, %c0_i32 : i32, i32, i32
  }
  func.func @transform_2(%arg0: i32, %arg1: i32) -> (i32, i32) {
    %c0_i32 = arith.constant 0 : i32
    %c0_i32_0 = arith.constant 0 : i32
    return %c0_i32, %arg0 : i32, i32
  }
  func.func @transform_3(%arg0: i32, %arg1: i32) -> (i32, i32) {
    %c0_i32 = arith.constant 0 : i32
    %c0_i32_0 = arith.constant 0 : i32
    return %c0_i32, %arg0 : i32, i32
  }
}

</mosaic_0001>

<bundles_post_ra>
// kernel: linear_pallas.1
= control target key start
LH: loop header
LB: loop body
LE: loop exit
PB: predicated region body
PF: predicated region fallthrough
CT: control target
= control target key end

     0   :  { %8 = vsyncpa [#allocation3], 0  ;;  %s3701_s0 = inlined_call_operand.vmem [shape: bf16[8,1024], index: 0, kind: input, shape index: {}]   ;;  %s3702_s1 = inlined_call_operand.hbm [shape: bf16[2,1024,512], index: 1, kind: input, shape index: {}]   ;;  %s3703_s2 = inlined_call_operand.hbm [shape: f32[1,1024], index: 2, kind: input, shape index: {}]   ;;  %s3704_s3 = inlined_call_operand.vmem [shape: f32[8,1024], index: 3, kind: output, shape index: {}]  }
   0x1   :  { %10 = vsyncpa [#allocation3 + $0x1], 0 }
   0x2   :  { %11 = vsyncpa [#allocation5], 0 }
   0x3   :  { %13 = vsyncpa [#allocation5 + $0x1], 0  ;;  %s3204_s12 = smov 0   ;;  %s3206_s13 = smov 0  }
   0x4   :  { %s3208_s14 = smov 0   ;;  %s3210_s15 = smov 0  }
   0x5   :  { %s3212_s16 = smov 0   ;;  %s3214_s17 = smov 0  }
   0x6 LB: > { %s2326_s18 = sadd.s32 4294967295, %s3178_s17   ;;  %s31_s19 = sadd.s32 1, %s3174_s16  ;;  %s3178_s17 = sphi %s3214_s17, %s19_s17   ;;  %s3174_s16 = sphi %s3212_s16, %s3716_s16   ;;  %s3170_s15 = sphi %s3210_s15, %s3715_s15   ;;  %s3166_s14 = sphi %s3208_s14, %s3714_s14   ;;  %s3162_s13 = sphi %s3206_s13, %s3713_s13   ;;  %s3158_s12 = sphi %s3204_s12, %s3712_s12  }
   0x7   : > { %p33_p0 = scmp.ge.s32.totalorder %s31_s19, 2  ;;  %s66_s20 = sadd.s32 1, %s3166_s14 }
   0x8   : > { %p73_p1 = scmp.ne.s32.totalorder %s3166_s14, %s3162_s13  ;;  %p74_p2 = scmp.eq.s32.totalorder %s3178_s17, 0 }
   0x9   : > { %s3718_s19 = smov (%p33_p0, %s31_s19), 0  ;;  %p79_p4 = scmp.ne.s32.totalorder %s3162_s13, %s3158_s12 }
   0xa   : > { %p3240_p3 = por %p74_p2, %p73_p1  ;;  %s61_s22 = ssub.s32 %s3174_s16, %s3718_s19 }
   0xb   : > { %p80_p5 = scmp.eq.s32.totalorder %s2326_s18, 0  ;;  %p64_p6 = scmp.eq.s32.totalorder %s61_s22, 0 }
   0xc   : > { %p2621_p8 = scmp.lt.s32.totalorder %s3178_s17, 2  ;;  %s3256_s25 = sand.u32 1, %s3166_s14  }
   0xd   : > { %p3247_p7 = por %p80_p5, %p79_p4  ;;  %s2608_s26 = sshll.u32 %s3174_s16, 15 }
   0xe   : > { %s3253_s24 = scalar_select %p64_p6, %s3166_s14, %s66_s20  }
   0xf   : > { %s3707_s23 = scalar_select %p3247_p7, 1, 0 }
  0x10   : > { %s2331_s27 = sshll.u32 %s3256_s25, 11  ;;  %s3263_s30 = scalar_lea.hbm %s3702_s1, %s2608_s26 }
  0x11   : > { %s168_s4 = scalar_lea.vmem [#allocation2], %s2331_s27  ;;  %p3267_p9 = pnand %p2621_p8, %p3240_p3 }
  0x12   : > { %s178_s5 = sshll.u32 %s168_s4, 4  ;;  %s165_s7 = scalar_lea.sflag [#allocation3], %s3256_s25  ;;  %s3271_s5 = int_to_ptr.vmem [resolvable:$true] %s178_s5 }
  0x13   : > { %s3064_s8 = scalar_lea.hbm %s3263_s30, 32768  ;;  %p3066_p11 = pneg %p3267_p9 }
  0x14   : > { %p3065_p10 = scmp.ne.s32.totalorder %s3263_s30, %s3064_s8  ;;  %s3069_s11 = scalar_lea.hbm %s3702_s1, 65536 }
  0x15   : > { %p3070_p0 = scmp.lt.u32.totalorder %s3263_s30, %s3702_s1  ;;  %p3071_p1 = scmp.lt.u32.totalorder %s3069_s11, %s3064_s8 }
  0x16   : > { %p3067_p12 = pnand %p3066_p11, %p3065_p10  ;;  %p3073_p3 = scmp.lt.u32.totalorder %s3064_s8, %s3263_s30 }
  0x17   : > { %p3072_p2 = por %p3071_p1, %p3070_p0 }
  0x18   : > { %p3068_p13 = pneg %p3067_p12 }
  0x19   : > { %p3074_p4 = por %p3073_p3, %p3072_p2 }
  0x1b   : > { %p3075_p5 = pnand %p3074_p4, %p3068_p13 }
  0x1d   : > { %3078 = shalt.err (!%p3075_p5)
}
  0x1e   : > { %s3079_s20 = scalar_lea.vmem %s3271_s5, 32768  ;;  %s3180_s21 = smov [#allocation2]  }
  0x1f   : > { %p3080_p6 = scmp.ne.s32.totalorder %s3271_s5, %s3079_s20  ;;  %s3084_s22 = sshll.u32 %s3180_s21, 4  ;;  %s3085_s22 = int_to_ptr.vmem [resolvable:$false] %s3084_s22 }
  0x20   : > { %s3086_s26 = scalar_lea.vmem %s3085_s22, 65536  ;;  %p3087_p12 = scmp.lt.s32.totalorder %s3271_s5, %s3085_s22 }
  0x21   : > { %p3082_p8 = pnand %p3080_p6, %p3066_p11  ;;  %p3088_p0 = scmp.lt.s32.totalorder %s3086_s26, %s3079_s20 }
  0x23   : > { %p3083_p10 = pneg %p3082_p8  ;;  %p3089_p1 = por %p3088_p0, %p3087_p12 }
  0x25   : > { %p3090_p2 = pnand %p3089_p1, %p3083_p10 }
  0x27   : > { %3093 = shalt.err (!%p3090_p2)
}
  0x28   : > { %s3181_s27 = smov 256   ;;  %s3182_s28 = smov 16  }
  0x29   : > { %2617 = dma.hbm_to_vmem [thread:$0]  (!%p3267_p9), %s3263_s30, 32768, %s3271_s5, %s165_s7, %s3181_s27, %s3181_s27, %s3182_s28  }
  0x2a   : > { %p2337_p13 = scmp.ge.s32.totalorder %s3178_s17, 1  ;;  %p205_p3 = scmp.lt.s32.totalorder %s3178_s17, 3 }
  0x2b   : > { %s2334_s29 = sshll.u32 %s3256_s25, 2  ;;  %s2609_s8 = sshll.u32 %s3174_s16, 6 }
  0x2c   : > { %p3304_p4 = pnand %p2337_p13, %p205_p3  ;;  %s192_s9 = scalar_lea.vmem [#allocation4], %s2334_s29 }
  0x2d   : > { %s200_s10 = sshll.u32 %s192_s9, 4  ;;  %s3312_s18 = scalar_lea.hbm %s3703_s2, %s2609_s8  ;;  %s201_s10 = int_to_ptr.vmem [resolvable:$true] %s200_s10 }
  0x2e   : > { %s3709_s4 = scalar_select %p3304_p4, 1, 0 }
  0x2f   : > { %s189_s30 = scalar_lea.sflag [#allocation5], %s3256_s25  ;;  %s3094_s5 = scalar_lea.hbm %s3312_s18, 64 }
  0x30   : > { %p3095_p5 = scmp.ne.s32.totalorder %s3312_s18, %s3094_s5  ;;  %s3099_s21 = scalar_lea.hbm %s3703_s2, 128 }
  0x31   : > { %p3100_p10 = scmp.lt.u32.totalorder %s3312_s18, %s3703_s2  ;;  %p3101_p12 = scmp.lt.u32.totalorder %s3099_s21, %s3094_s5 }
  0x32   : > { %p3097_p6 = pnand %p3095_p5, %p3066_p11  ;;  %p3103_p1 = scmp.lt.u32.totalorder %s3094_s5, %s3312_s18 }
  0x33   : > { %p3102_p0 = por %p3101_p12, %p3100_p10 }
  0x34   : > { %p3098_p8 = pneg %p3097_p6 }
  0x35   : > { %p3104_p2 = por %p3103_p1, %p3102_p0 }
  0x37   : > { %p3105_p13 = pnand %p3104_p2, %p3098_p8 }
  0x39   : > { %3108 = shalt.err (!%p3105_p13)
}
  0x3a   : > { %s3109_s25 = scalar_lea.vmem %s201_s10, 64  ;;  %s3183_s27 = smov [#allocation4]  }
  0x3b   : > { %p3110_p3 = scmp.ne.s32.totalorder %s201_s10, %s3109_s25  ;;  %s3114_s28 = sshll.u32 %s3183_s27, 4  ;;  %s3115_s28 = int_to_ptr.vmem [resolvable:$false] %s3114_s28 }
  0x3c   : > { %s3116_s29 = scalar_lea.vmem %s3115_s28, 128  ;;  %p3117_p7 = scmp.lt.s32.totalorder %s201_s10, %s3115_s28 }
  0x3d   : > { %p3112_p5 = pnand %p3110_p3, %p3066_p11  ;;  %p3118_p4 = scmp.lt.s32.totalorder %s3116_s29, %s3109_s25 }
  0x3f   : > { %p3113_p6 = pneg %p3112_p5  ;;  %p3119_p10 = por %p3118_p4, %p3117_p7 }
  0x41   : > { %p3120_p12 = pnand %p3119_p10, %p3113_p6 }
  0x43   : > { %3123 = shalt.err (!%p3120_p12)
}
  0x44   : > { %2620 = dma.hbm_to_vmem [thread:$0]  (!%p3267_p9), %s3312_s18, 64, %s201_s10, %s189_s30  }
  0x45   : > { %p3710_p8 = scmp.ne.s32.totalorder %s3709_s4, 0 }
  0x46   : > { %s211_s8 = sand.u32 (!%p3710_p8), 1, %s3162_s13   ;;  %p3711_p11 = scmp.ne.s32.totalorder (!%p3710_p8), %s3707_s23, 0 }
  0x47   : > { %209 = sbr.rel (%p3710_p8) target bundleno = 559 (0x22f), region = 32  ;;  %s2338_s9 = sshll.u32 (!%p3710_p8), %s211_s8, 11 }
  0x48   : > { %s212_s11 = scalar_lea.sflag (!%p3710_p8), [#allocation3], %s211_s8  ;;  %s3337_s12 = scalar_lea.vmem (!%p3710_p8), [#allocation2], %s2338_s9 }
  0x4e   : > { %3149 = dma.done.wait (%p3711_p11), %s212_s11, 32768  }
  0x4f   : > { %3151 = vsyncadd (%p3711_p11), %s212_s11, 4294934528  ;;  %s2339_s5 = sshll.u32 %s211_s8, 2  ;;  %s221_s6 = scalar_lea.sflag [#allocation5], %s211_s8 }
  0x50   : > { %s3343_s7 = scalar_lea.vmem [#allocation4], %s2339_s5 }
  0x51   : > { %3153 = dma.done.wait (%p3711_p11), %s221_s6, 64  }
  0x52   : > { %3155 = vsyncadd (%p3711_p11), %s221_s6, 4294967232  ;;  %v2672_v0 = vld [vmem:[%s3337_s12 + $0x4] ss:$16 sps:$4 sm:$0xff]   ;;  %v2676_v2 = vld [vmem:[%s3337_s12] ss:$16 sps:$4 sm:$0xff]   ;;  %s2340_s26 = sshll.u32 %s3170_s15, 2 }
  0x53   : > { %v2674_v1 = vld [vmem:[%s3337_s12 + $0x204] ss:$16 sps:$4 sm:$0xff]   ;;  %1873 = vmatprep.subr.bf16.mxu0 %v2672_v0  ;;  %v2677_v3 = vld [vmem:[%s3337_s12 + $0x200] ss:$16 sps:$4 sm:$0xff]   ;;  %v306_v48 = vld [vmem:[%s3701_s0 + $0x8] sm:$0xff]  ;;  %p266_p7 = scmp.lt.s32.totalorder %s2340_s26, 7 }
  0x54   : > { %1914 = vmatprep.subr.bf16.mxu1 %v2674_v1  ;;  %v2678_v4 = vld [vmem:[%s3337_s12 + $0x24] ss:$16 sps:$4 sm:$0xff]   ;;  %1874 = vmatpush1.bf16.msra.mxu0 %v2676_v2  ;;  %v2682_v6 = vld [vmem:[%s3337_s12 + $0x20] ss:$16 sps:$4 sm:$0xff]   ;;  %v3405_v51 = vcombine.high %v306_v48, %v306_v48 }
  0x55   : > { %1915 = vmatpush1.bf16.msra.mxu1 %v2677_v3  ;;  %v2680_v5 = vld [vmem:[%s3337_s12 + $0x224] ss:$16 sps:$4 sm:$0xff]   ;;  %1875 = vmatprep.subr.bf16.mxu0 %v2678_v4  ;;  %v2683_v7 = vld [vmem:[%s3337_s12 + $0x220] ss:$16 sps:$4 sm:$0xff]   ;;  %s3720_s26 = smov (!%p266_p7, %s2340_s26), 7 }
  0x56   : > { %1916 = vmatprep.subr.bf16.mxu1 %v2680_v5  ;;  %v2684_v8 = vld [vmem:[%s3337_s12 + $0x44] ss:$16 sps:$4 sm:$0xff]   ;;  %v2688_v10 = vld [vmem:[%s3337_s12 + $0x40] ss:$16 sps:$4 sm:$0xff]   ;;  %1946 = vmatprep.mubr.bf16.mxu1 %v3405_v51  ;;  %s2341_s25 = sshll.u32 %s3720_s26, 3 }
  0x57   : > { %v2686_v9 = vld [vmem:[%s3337_s12 + $0x244] ss:$16 sps:$4 sm:$0xff]   ;;  %v2689_v11 = vld [vmem:[%s3337_s12 + $0x240] ss:$16 sps:$4 sm:$0xff]   ;;  %s3618_s28 = scalar_lea.vmem %s3704_s3, %s2341_s25 }
  0x58   : > { %1876 = vmatpush1.bf16.msra.mxu0 %v2682_v6  ;;  %v2690_v12 = vld [vmem:[%s3337_s12 + $0x64] ss:$16 sps:$4 sm:$0xff]   ;;  %v2694_v14 = vld [vmem:[%s3337_s12 + $0x60] ss:$16 sps:$4 sm:$0xff]  }
  0x59   : > { %1917 = vmatpush1.bf16.msra.mxu1 %v2683_v7  ;;  %1877 = vmatprep.subr.bf16.mxu0 %v2684_v8  ;;  %v2692_v13 = vld [vmem:[%s3337_s12 + $0x264] ss:$16 sps:$4 sm:$0xff]   ;;  %v2695_v15 = vld [vmem:[%s3337_s12 + $0x260] ss:$16 sps:$4 sm:$0xff]   ;;  %v3429_v7 = vcombine.low %v306_v48, %v306_v48 }
  0x5a   : > { %1918 = vmatprep.subr.bf16.mxu1 %v2686_v9  ;;  %v2696_v16 = vld [vmem:[%s3337_s12 + $0x84] ss:$16 sps:$4 sm:$0xff]   ;;  %v2700_v18 = vld [vmem:[%s3337_s12 + $0x80] ss:$16 sps:$4 sm:$0xff]  }
  0x5b   : > { %v2698_v17 = vld [vmem:[%s3337_s12 + $0x284] ss:$16 sps:$4 sm:$0xff]   ;;  %v2701_v19 = vld [vmem:[%s3337_s12 + $0x280] ss:$16 sps:$4 sm:$0xff]  }
  0x5c   : > { %1878 = vmatpush1.bf16.msra.mxu0 %v2688_v10  ;;  %v2702_v20 = vld [vmem:[%s3337_s12 + $0xa4] ss:$16 sps:$4 sm:$0xff]   ;;  %v2706_v22 = vld [vmem:[%s3337_s12 + $0xa0] ss:$16 sps:$4 sm:$0xff]  }
  0x5d   : > { %1919 = vmatpush1.bf16.msra.mxu1 %v2689_v11  ;;  %1879 = vmatprep.subr.bf16.mxu0 %v2690_v12  ;;  %v2704_v21 = vld [vmem:[%s3337_s12 + $0x2a4] ss:$16 sps:$4 sm:$0xff]   ;;  %v2707_v23 = vld [vmem:[%s3337_s12 + $0x2a0] ss:$16 sps:$4 sm:$0xff]  }
  0x5e   : > { %1920 = vmatprep.subr.bf16.mxu1 %v2692_v13  ;;  %v2708_v24 = vld [vmem:[%s3337_s12 + $0xc4] ss:$16 sps:$4 sm:$0xff]   ;;  %v2712_v26 = vld [vmem:[%s3337_s12 + $0xc0] ss:$16 sps:$4 sm:$0xff]  }
  0x5f   : > { %v2710_v25 = vld [vmem:[%s3337_s12 + $0x2c4] ss:$16 sps:$4 sm:$0xff]   ;;  %v2713_v27 = vld [vmem:[%s3337_s12 + $0x2c0] ss:$16 sps:$4 sm:$0xff]  }
  0x60   : > { %1880 = vmatpush1.bf16.msra.mxu0 %v2694_v14  ;;  %v2714_v28 = vld [vmem:[%s3337_s12 + $0xe4] ss:$16 sps:$4 sm:$0xff]   ;;  %v2718_v30 = vld [vmem:[%s3337_s12 + $0xe0] ss:$16 sps:$4 sm:$0xff]  }
  0x61   : > { %1921 = vmatpush1.bf16.msra.mxu1 %v2695_v15  ;;  %1881 = vmatprep.subr.bf16.mxu0 %v2696_v16  ;;  %v2716_v29 = vld [vmem:[%s3337_s12 + $0x2e4] ss:$16 sps:$4 sm:$0xff]   ;;  %v2719_v31 = vld [vmem:[%s3337_s12 + $0x2e0] ss:$16 sps:$4 sm:$0xff]  }
  0x62   : > { %1922 = vmatprep.subr.bf16.mxu1 %v2698_v17  ;;  %v2720_v32 = vld [vmem:[%s3337_s12 + $0x104] ss:$16 sps:$4 sm:$0xff]   ;;  %v2724_v34 = vld [vmem:[%s3337_s12 + $0x100] ss:$16 sps:$4 sm:$0xff]  }
  0x63   : > { %v2722_v33 = vld [vmem:[%s3337_s12 + $0x304] ss:$16 sps:$4 sm:$0xff]   ;;  %v2725_v35 = vld [vmem:[%s3337_s12 + $0x300] ss:$16 sps:$4 sm:$0xff]  }
  0x64   : > { %1882 = vmatpush1.bf16.msra.mxu0 %v2700_v18  ;;  %v2726_v36 = vld [vmem:[%s3337_s12 + $0x124] ss:$16 sps:$4 sm:$0xff]   ;;  %v2730_v38 = vld [vmem:[%s3337_s12 + $0x120] ss:$16 sps:$4 sm:$0xff]  }
  0x65   : > { %1923 = vmatpush1.bf16.msra.mxu1 %v2701_v19  ;;  %1883 = vmatprep.subr.bf16.mxu0 %v2702_v20  ;;  %v2728_v37 = vld [vmem:[%s3337_s12 + $0x324] ss:$16 sps:$4 sm:$0xff]   ;;  %v2731_v39 = vld [vmem:[%s3337_s12 + $0x320] ss:$16 sps:$4 sm:$0xff]  }
  0x66   : > { %1924 = vmatprep.subr.bf16.mxu1 %v2704_v21  ;;  %v2732_v40 = vld [vmem:[%s3337_s12 + $0x144] ss:$16 sps:$4 sm:$0xff]   ;;  %v2736_v42 = vld [vmem:[%s3337_s12 + $0x140] ss:$16 sps:$4 sm:$0xff]  }
  0x67   : > { %v2734_v41 = vld [vmem:[%s3337_s12 + $0x344] ss:$16 sps:$4 sm:$0xff]   ;;  %v2737_v43 = vld [vmem:[%s3337_s12 + $0x340] ss:$16 sps:$4 sm:$0xff]  }
  0x68   : > { %1884 = vmatpush1.bf16.msra.mxu0 %v2706_v22  ;;  %v2738_v44 = vld [vmem:[%s3337_s12 + $0x164] ss:$16 sps:$4 sm:$0xff]   ;;  %v2742_v49 = vld [vmem:[%s3337_s12 + $0x160] ss:$16 sps:$4 sm:$0xff]  }
  0x69   : > { %1925 = vmatpush1.bf16.msra.mxu1 %v2707_v23  ;;  %1885 = vmatprep.subr.bf16.mxu0 %v2708_v24  ;;  %v2740_v45 = vld [vmem:[%s3337_s12 + $0x364] ss:$16 sps:$4 sm:$0xff]   ;;  %v2743_v50 = vld [vmem:[%s3337_s12 + $0x360] ss:$16 sps:$4 sm:$0xff]  }
  0x6a   : > { %1926 = vmatprep.subr.bf16.mxu1 %v2710_v25  ;;  %v305_v46 = vld [vmem:[%s3701_s0] sm:$0xff] }
  0x6b   : > { %v3398_v47 = vcombine.high %v305_v46, %v305_v46  ;;  %v2744_v52 = vld [vmem:[%s3337_s12 + $0x184] ss:$16 sps:$4 sm:$0xff]   ;;  %v2748_v54 = vld [vmem:[%s3337_s12 + $0x180] ss:$16 sps:$4 sm:$0xff]   ;;  %v3427_v6 = vcombine.low %v305_v46, %v305_v46 }
  0x6c   : > { %1886 = vmatpush1.bf16.msra.mxu0 %v2712_v26  ;;  %v2746_v53 = vld [vmem:[%s3337_s12 + $0x384] ss:$16 sps:$4 sm:$0xff]   ;;  %v2749_v55 = vld [vmem:[%s3337_s12 + $0x380] ss:$16 sps:$4 sm:$0xff]  }
  0x6d   : > { %1927 = vmatpush1.bf16.msra.mxu1 %v2713_v27  ;;  %1887 = vmatprep.subr.bf16.mxu0 %v2714_v28  ;;  %v2750_v56 = vld [vmem:[%s3337_s12 + $0x1a4] ss:$16 sps:$4 sm:$0xff]   ;;  %v2754_v58 = vld [vmem:[%s3337_s12 + $0x1a0] ss:$16 sps:$4 sm:$0xff]  }
  0x6e   : > { %1928 = vmatprep.subr.bf16.mxu1 %v2716_v29  ;;  %1905 = vmatprep.mubr.bf16.mxu0 %v3398_v47  ;;  %v2752_v57 = vld [vmem:[%s3337_s12 + $0x3a4] ss:$16 sps:$4 sm:$0xff]   ;;  %v2755_v59 = vld [vmem:[%s3337_s12 + $0x3a0] ss:$16 sps:$4 sm:$0xff]  }
  0x6f   : > { %v2756_v60 = vld [vmem:[%s3337_s12 + $0x1c4] ss:$16 sps:$4 sm:$0xff]   ;;  %v2760_v62 = vld [vmem:[%s3337_s12 + $0x1c0] ss:$16 sps:$4 sm:$0xff]  }
  0x70   : > { %1888 = vmatpush1.bf16.msra.mxu0 %v2718_v30  ;;  %v2758_v61 = vld [vmem:[%s3337_s12 + $0x3c4] ss:$16 sps:$4 sm:$0xff]   ;;  %v2761_v63 = vld [vmem:[%s3337_s12 + $0x3c0] ss:$16 sps:$4 sm:$0xff]  }
  0x71   : > { %1929 = vmatpush1.bf16.msra.mxu1 %v2719_v31  ;;  %1889 = vmatprep.subr.bf16.mxu0 %v2720_v32  ;;  %v2762_v0 = vld [vmem:[%s3337_s12 + $0x1e4] ss:$16 sps:$4 sm:$0xff]   ;;  %v2766_v2 = vld [vmem:[%s3337_s12 + $0x1e0] ss:$16 sps:$4 sm:$0xff]  }
  0x72   : > { %1930 = vmatprep.subr.bf16.mxu1 %v2722_v33  ;;  %v2764_v1 = vld [vmem:[%s3337_s12 + $0x3e4] ss:$16 sps:$4 sm:$0xff]   ;;  %v2767_v3 = vld [vmem:[%s3337_s12 + $0x3e0] ss:$16 sps:$4 sm:$0xff]   ;;  %v3465_v33 = vld [vmem:[%s3701_s0 + $0x18] sm:$0xff] }
  0x73   : > { %v2774_v4 = vld [vmem:[%s3337_s12 + $0x404] ss:$16 sps:$4 sm:$0xff]   ;;  %v2772_v8 = vld [vmem:[%s3337_s12 + $0x400] ss:$16 sps:$4 sm:$0xff]  }
  0x74   : > { %1890 = vmatpush1.bf16.msra.mxu0 %v2724_v34  ;;  %v2777_v5 = vld [vmem:[%s3337_s12 + $0x604] ss:$16 sps:$4 sm:$0xff]   ;;  %v2775_v9 = vld [vmem:[%s3337_s12 + $0x600] ss:$16 sps:$4 sm:$0xff]  }
  0x75   : > { %1931 = vmatpush1.bf16.msra.mxu1 %v2725_v35  ;;  %1891 = vmatprep.subr.bf16.mxu0 %v2726_v36  ;;  %v2780_v10 = vld [vmem:[%s3337_s12 + $0x424] ss:$16 sps:$4 sm:$0xff]   ;;  %v2778_v12 = vld [vmem:[%s3337_s12 + $0x420] ss:$16 sps:$4 sm:$0xff]  }
  0x76   : > { %1932 = vmatprep.subr.bf16.mxu1 %v2728_v37  ;;  %v2783_v11 = vld [vmem:[%s3337_s12 + $0x624] ss:$16 sps:$4 sm:$0xff]   ;;  %v2781_v13 = vld [vmem:[%s3337_s12 + $0x620] ss:$16 sps:$4 sm:$0xff]   ;;  %v3475_v37 = vcombine.high %v3465_v33, %v3465_v33 }
  0x77   : > { %v2786_v14 = vld [vmem:[%s3337_s12 + $0x444] ss:$16 sps:$4 sm:$0xff]   ;;  %v2784_v16 = vld [vmem:[%s3337_s12 + $0x440] ss:$16 sps:$4 sm:$0xff]  }
  0x78   : > { %1892 = vmatpush1.bf16.msra.mxu0 %v2730_v38  ;;  %v2789_v15 = vld [vmem:[%s3337_s12 + $0x644] ss:$16 sps:$4 sm:$0xff]   ;;  %v2787_v17 = vld [vmem:[%s3337_s12 + $0x640] ss:$16 sps:$4 sm:$0xff]  }
  0x79   : > { %1933 = vmatpush1.bf16.msra.mxu1 %v2731_v39  ;;  %1893 = vmatprep.subr.bf16.mxu0 %v2732_v40  ;;  %v2792_v18 = vld [vmem:[%s3337_s12 + $0x464] ss:$16 sps:$4 sm:$0xff]   ;;  %v2790_v20 = vld [vmem:[%s3337_s12 + $0x460] ss:$16 sps:$4 sm:$0xff]  }
  0x7a   : > { %1934 = vmatprep.subr.bf16.mxu1 %v2734_v41  ;;  %v2795_v19 = vld [vmem:[%s3337_s12 + $0x664] ss:$16 sps:$4 sm:$0xff]   ;;  %v2793_v21 = vld [vmem:[%s3337_s12 + $0x660] ss:$16 sps:$4 sm:$0xff]  }
  0x7b   : > { %v2798_v22 = vld [vmem:[%s3337_s12 + $0x484] ss:$16 sps:$4 sm:$0xff]   ;;  %v2796_v24 = vld [vmem:[%s3337_s12 + $0x480] ss:$16 sps:$4 sm:$0xff]  }
  0x7c   : > { %1894 = vmatpush1.bf16.msra.mxu0 %v2736_v42  ;;  %v2801_v23 = vld [vmem:[%s3337_s12 + $0x684] ss:$16 sps:$4 sm:$0xff]   ;;  %v2799_v25 = vld [vmem:[%s3337_s12 + $0x680] ss:$16 sps:$4 sm:$0xff]  }
  0x7d   : > { %1935 = vmatpush1.bf16.msra.mxu1 %v2737_v43  ;;  %1895 = vmatprep.subr.bf16.mxu0 %v2738_v44  ;;  %v2804_v26 = vld [vmem:[%s3337_s12 + $0x4a4] ss:$16 sps:$4 sm:$0xff]   ;;  %v2802_v28 = vld [vmem:[%s3337_s12 + $0x4a0] ss:$16 sps:$4 sm:$0xff]  }
  0x7e   : > { %1936 = vmatprep.subr.bf16.mxu1 %v2740_v45  ;;  %v2807_v27 = vld [vmem:[%s3337_s12 + $0x6a4] ss:$16 sps:$4 sm:$0xff]   ;;  %v2805_v29 = vld [vmem:[%s3337_s12 + $0x6a0] ss:$16 sps:$4 sm:$0xff]  }
  0x7f   : > { %v2810_v30 = vld [vmem:[%s3337_s12 + $0x4c4] ss:$16 sps:$4 sm:$0xff]   ;;  %v2808_v34 = vld [vmem:[%s3337_s12 + $0x4c0] ss:$16 sps:$4 sm:$0xff]  }
  0x80   : > { %1896 = vmatpush1.bf16.msra.mxu0 %v2742_v49  ;;  %v2813_v31 = vld [vmem:[%s3337_s12 + $0x6c4] ss:$16 sps:$4 sm:$0xff]   ;;  %v2811_v35 = vld [vmem:[%s3337_s12 + $0x6c0] ss:$16 sps:$4 sm:$0xff]  }
  0x81   : > { %1937 = vmatpush1.bf16.msra.mxu1 %v2743_v50  ;;  %1897 = vmatprep.subr.bf16.mxu0 %v2744_v52  ;;  %v3460_v32 = vld [vmem:[%s3701_s0 + $0x10] sm:$0xff] }
  0x82   : > { %1938 = vmatprep.subr.bf16.mxu1 %v2746_v53  ;;  %v3471_v36 = vcombine.high %v3460_v32, %v3460_v32  ;;  %v2816_v38 = vld [vmem:[%s3337_s12 + $0x4e4] ss:$16 sps:$4 sm:$0xff]   ;;  %v2814_v40 = vld [vmem:[%s3337_s12 + $0x4e0] ss:$16 sps:$4 sm:$0xff]  }
  0x83   : > { %v2819_v39 = vld [vmem:[%s3337_s12 + $0x6e4] ss:$16 sps:$4 sm:$0xff]   ;;  %v2817_v41 = vld [vmem:[%s3337_s12 + $0x6e0] ss:$16 sps:$4 sm:$0xff]  }
  0x84   : > { %1898 = vmatpush1.bf16.msra.mxu0 %v2748_v54  ;;  %v2822_v42 = vld [vmem:[%s3337_s12 + $0x504] ss:$16 sps:$4 sm:$0xff]   ;;  %v2820_v44 = vld [vmem:[%s3337_s12 + $0x500] ss:$16 sps:$4 sm:$0xff]  }
  0x85   : > { %1939 = vmatpush1.bf16.msra.mxu1 %v2749_v55  ;;  %1899 = vmatprep.subr.bf16.mxu0 %v2750_v56  ;;  %v2825_v43 = vld [vmem:[%s3337_s12 + $0x704] ss:$16 sps:$4 sm:$0xff]   ;;  %v2823_v45 = vld [vmem:[%s3337_s12 + $0x700] ss:$16 sps:$4 sm:$0xff]  }
  0x86   : > { %1940 = vmatprep.subr.bf16.mxu1 %v2752_v57  ;;  %v2828_v46 = vld [vmem:[%s3337_s12 + $0x524] ss:$16 sps:$4 sm:$0xff]   ;;  %v2826_v49 = vld [vmem:[%s3337_s12 + $0x520] ss:$16 sps:$4 sm:$0xff]  }
  0x87   : > { %v2831_v48 = vld [vmem:[%s3337_s12 + $0x724] ss:$16 sps:$4 sm:$0xff]   ;;  %v2829_v50 = vld [vmem:[%s3337_s12 + $0x720] ss:$16 sps:$4 sm:$0xff]  }
  0x88   : > { %1900 = vmatpush1.bf16.msra.mxu0 %v2754_v58  ;;  %v2834_v52 = vld [vmem:[%s3337_s12 + $0x544] ss:$16 sps:$4 sm:$0xff]   ;;  %v2832_v54 = vld [vmem:[%s3337_s12 + $0x540] ss:$16 sps:$4 sm:$0xff]  }
  0x89   : > { %1941 = vmatpush1.bf16.msra.mxu1 %v2755_v59  ;;  %1901 = vmatprep.subr.bf16.mxu0 %v2756_v60  ;;  %v2837_v53 = vld [vmem:[%s3337_s12 + $0x744] ss:$16 sps:$4 sm:$0xff]   ;;  %v2835_v55 = vld [vmem:[%s3337_s12 + $0x740] ss:$16 sps:$4 sm:$0xff]  }
  0x8a   : > { %1942 = vmatprep.subr.bf16.mxu1 %v2758_v61  ;;  %v2840_v56 = vld [vmem:[%s3337_s12 + $0x564] ss:$16 sps:$4 sm:$0xff]   ;;  %v2838_v58 = vld [vmem:[%s3337_s12 + $0x560] ss:$16 sps:$4 sm:$0xff]  }
  0x8b   : > { %v2843_v57 = vld [vmem:[%s3337_s12 + $0x764] ss:$16 sps:$4 sm:$0xff]   ;;  %v2841_v59 = vld [vmem:[%s3337_s12 + $0x760] ss:$16 sps:$4 sm:$0xff]  }
  0x8c   : > { %1902 = vmatpush1.bf16.msra.mxu0 %v2760_v62  ;;  %v2846_v60 = vld [vmem:[%s3337_s12 + $0x584] ss:$16 sps:$4 sm:$0xff]   ;;  %v2844_v62 = vld [vmem:[%s3337_s12 + $0x580] ss:$16 sps:$4 sm:$0xff]  }
  0x8d   : > { %1943 = vmatpush1.bf16.msra.mxu1 %v2761_v63  ;;  %1903 = vmatprep.subr.bf16.mxu0 %v2762_v0  ;;  %v2849_v61 = vld [vmem:[%s3337_s12 + $0x784] ss:$16 sps:$4 sm:$0xff]   ;;  %v2847_v63 = vld [vmem:[%s3337_s12 + $0x780] ss:$16 sps:$4 sm:$0xff]  }
  0x8e   : > { %1944 = vmatprep.subr.bf16.mxu1 %v2764_v1  ;;  %v2852_v0 = vld [vmem:[%s3337_s12 + $0x5a4] ss:$16 sps:$4 sm:$0xff]  }
  0x8f   : > { %v2855_v1 = vld [vmem:[%s3337_s12 + $0x7a4] ss:$16 sps:$4 sm:$0xff]  }
  0x90   : > { %1904 = vmatpush1.bf16.msra.mxu0 %v2766_v2  ;;  %v2850_v2 = vld [vmem:[%s3337_s12 + $0x5a0] ss:$16 sps:$4 sm:$0xff]  }
  0x91   : > { %1945 = vmatpush1.bf16.msra.mxu1 %v2767_v3  ;;  %1955 = vmatprep.subr.bf16.mxu0 %v2774_v4  ;;  %v2853_v3 = vld [vmem:[%s3337_s12 + $0x7a0] ss:$16 sps:$4 sm:$0xff]   ;;  %v2858_v4 = vld [vmem:[%s3337_s12 + $0x5c4] ss:$16 sps:$4 sm:$0xff]  }
  0x92   : > { %1996 = vmatprep.subr.bf16.mxu1 %v2777_v5  ;;  %v2861_v5 = vld [vmem:[%s3337_s12 + $0x7c4] ss:$16 sps:$4 sm:$0xff]  }
  0x93   : > { %1906 = vmatmul.mubr.bf16.vlgmr.msra.gmra.mrb[0].mxu0 %v3427_v6 }
  0x94   : > { %1947 = vmatmul.mubr.bf16.vlgmr.msra.gmra.mrb[0].mxu1 %v3429_v7  ;;  %1956 = vmatpush1.bf16.msra.mxu0 %v2772_v8  ;;  %v2856_v8 = vld [vmem:[%s3337_s12 + $0x5c0] ss:$16 sps:$4 sm:$0xff]  }
  0x95   : > { %1997 = vmatpush1.bf16.msra.mxu1 %v2775_v9  ;;  %1957 = vmatprep.subr.bf16.mxu0 %v2780_v10  ;;  %v2859_v9 = vld [vmem:[%s3337_s12 + $0x7c0] ss:$16 sps:$4 sm:$0xff]   ;;  %v2864_v10 = vld [vmem:[%s3337_s12 + $0x5e4] ss:$16 sps:$4 sm:$0xff]  }
  0x96   : > { %1998 = vmatprep.subr.bf16.mxu1 %v2783_v11  ;;  %1987 = vmatprep.mubr.bf16.mxu0 %v3471_v36  ;;  %v2867_v11 = vld [vmem:[%s3337_s12 + $0x7e4] ss:$16 sps:$4 sm:$0xff]  }
  0x97   : > { %2028 = vmatprep.mubr.bf16.mxu1 %v3475_v37 }
  0x98   : > { %1958 = vmatpush1.bf16.msra.mxu0 %v2778_v12  ;;  %v2862_v12 = vld [vmem:[%s3337_s12 + $0x5e0] ss:$16 sps:$4 sm:$0xff]  }
  0x99   : > { %1999 = vmatpush1.bf16.msra.mxu1 %v2781_v13  ;;  %1959 = vmatprep.subr.bf16.mxu0 %v2786_v14  ;;  %v2865_v13 = vld [vmem:[%s3337_s12 + $0x7e0] ss:$16 sps:$4 sm:$0xff]   ;;  %v2874_v14 = vld [vmem:[%s3337_s12 + $0xc] ss:$16 sps:$4 sm:$0xff]  }
  0x9a   : > { %2000 = vmatprep.subr.bf16.mxu1 %v2789_v15  ;;  %v2877_v15 = vld [vmem:[%s3337_s12 + $0x20c] ss:$16 sps:$4 sm:$0xff]  }
  0x9c   : > { %1960 = vmatpush1.bf16.msra.mxu0 %v2784_v16  ;;  %v3519_v16 = vcombine.low %v3460_v32, %v3460_v32  ;;  %v2896_v32 = vld [vmem:[%s3337_s12 + $0x88] ss:$16 sps:$4 sm:$0xff]  }
  0x9d   : > { %2001 = vmatpush1.bf16.msra.mxu1 %v2787_v17  ;;  %1961 = vmatprep.subr.bf16.mxu0 %v2792_v18  ;;  %v3523_v17 = vcombine.low %v3465_v33, %v3465_v33  ;;  %v2872_v18 = vld [vmem:[%s3337_s12 + $0x8] ss:$16 sps:$4 sm:$0xff]  }
  0x9e   : > { %2002 = vmatprep.subr.bf16.mxu1 %v2795_v19  ;;  %v2875_v19 = vld [vmem:[%s3337_s12 + $0x208] ss:$16 sps:$4 sm:$0xff]  }
  0x9f   : > { %v2899_v33 = vld [vmem:[%s3337_s12 + $0x288] ss:$16 sps:$4 sm:$0xff]  }
  0xa0   : > { %1962 = vmatpush1.bf16.msra.mxu0 %v2790_v20  ;;  %v2880_v20 = vld [vmem:[%s3337_s12 + $0x2c] ss:$16 sps:$4 sm:$0xff]  }
  0xa1   : > { %2003 = vmatpush1.bf16.msra.mxu1 %v2793_v21  ;;  %1963 = vmatprep.subr.bf16.mxu0 %v2798_v22  ;;  %v2883_v21 = vld [vmem:[%s3337_s12 + $0x22c] ss:$16 sps:$4 sm:$0xff]   ;;  %v2878_v22 = vld [vmem:[%s3337_s12 + $0x28] ss:$16 sps:$4 sm:$0xff]  }
  0xa2   : > { %2004 = vmatprep.subr.bf16.mxu1 %v2801_v23  ;;  %v2881_v23 = vld [vmem:[%s3337_s12 + $0x228] ss:$16 sps:$4 sm:$0xff]  }
  0xa4   : > { %1964 = vmatpush1.bf16.msra.mxu0 %v2796_v24  ;;  %v2886_v24 = vld [vmem:[%s3337_s12 + $0x4c] ss:$16 sps:$4 sm:$0xff]  }
  0xa5   : > { %2005 = vmatpush1.bf16.msra.mxu1 %v2799_v25  ;;  %1965 = vmatprep.subr.bf16.mxu0 %v2804_v26  ;;  %v2889_v25 = vld [vmem:[%s3337_s12 + $0x24c] ss:$16 sps:$4 sm:$0xff]   ;;  %v2884_v26 = vld [vmem:[%s3337_s12 + $0x48] ss:$16 sps:$4 sm:$0xff]  }
  0xa6   : > { %2006 = vmatprep.subr.bf16.mxu1 %v2807_v27  ;;  %v2887_v27 = vld [vmem:[%s3337_s12 + $0x248] ss:$16 sps:$4 sm:$0xff]  }
  0xa8   : > { %1966 = vmatpush1.bf16.msra.mxu0 %v2802_v28  ;;  %v2892_v28 = vld [vmem:[%s3337_s12 + $0x6c] ss:$16 sps:$4 sm:$0xff]  }
  0xa9   : > { %2007 = vmatpush1.bf16.msra.mxu1 %v2805_v29  ;;  %1967 = vmatprep.subr.bf16.mxu0 %v2810_v30  ;;  %v2895_v29 = vld [vmem:[%s3337_s12 + $0x26c] ss:$16 sps:$4 sm:$0xff]   ;;  %v2890_v30 = vld [vmem:[%s3337_s12 + $0x68] ss:$16 sps:$4 sm:$0xff]  }
  0xaa   : > { %2008 = vmatprep.subr.bf16.mxu1 %v2813_v31  ;;  %v2893_v31 = vld [vmem:[%s3337_s12 + $0x268] ss:$16 sps:$4 sm:$0xff]  }
  0xac   : > { %1968 = vmatpush1.bf16.msra.mxu0 %v2808_v34  ;;  %v2904_v34 = vld [vmem:[%s3337_s12 + $0xac] ss:$16 sps:$4 sm:$0xff]  }
  0xad   : > { %2009 = vmatpush1.bf16.msra.mxu1 %v2811_v35  ;;  %1969 = vmatprep.subr.bf16.mxu0 %v2816_v38  ;;  %v2907_v35 = vld [vmem:[%s3337_s12 + $0x2ac] ss:$16 sps:$4 sm:$0xff]   ;;  %v2902_v38 = vld [vmem:[%s3337_s12 + $0xa8] ss:$16 sps:$4 sm:$0xff]  }
  0xae   : > { %2010 = vmatprep.subr.bf16.mxu1 %v2819_v39  ;;  %v2905_v39 = vld [vmem:[%s3337_s12 + $0x2a8] ss:$16 sps:$4 sm:$0xff]  }
  0xb0   : > { %1970 = vmatpush1.bf16.msra.mxu0 %v2814_v40  ;;  %v2910_v40 = vld [vmem:[%s3337_s12 + $0xcc] ss:$16 sps:$4 sm:$0xff]  }
  0xb1   : > { %2011 = vmatpush1.bf16.msra.mxu1 %v2817_v41  ;;  %1971 = vmatprep.subr.bf16.mxu0 %v2822_v42  ;;  %v2913_v41 = vld [vmem:[%s3337_s12 + $0x2cc] ss:$16 sps:$4 sm:$0xff]   ;;  %v2908_v42 = vld [vmem:[%s3337_s12 + $0xc8] ss:$16 sps:$4 sm:$0xff]  }
  0xb2   : > { %2012 = vmatprep.subr.bf16.mxu1 %v2825_v43  ;;  %v2911_v43 = vld [vmem:[%s3337_s12 + $0x2c8] ss:$16 sps:$4 sm:$0xff]  }
  0xb4   : > { %1972 = vmatpush1.bf16.msra.mxu0 %v2820_v44  ;;  %v2916_v44 = vld [vmem:[%s3337_s12 + $0xec] ss:$16 sps:$4 sm:$0xff]  }
  0xb5   : > { %2013 = vmatpush1.bf16.msra.mxu1 %v2823_v45  ;;  %1973 = vmatprep.subr.bf16.mxu0 %v2828_v46  ;;  %v2919_v45 = vld [vmem:[%s3337_s12 + $0x2ec] ss:$16 sps:$4 sm:$0xff]   ;;  %v2914_v46 = vld [vmem:[%s3337_s12 + $0xe8] ss:$16 sps:$4 sm:$0xff]  }
  0xb6   : > { %2014 = vmatprep.subr.bf16.mxu1 %v2831_v48  ;;  %v2917_v48 = vld [vmem:[%s3337_s12 + $0x2e8] ss:$16 sps:$4 sm:$0xff]  }
  0xb8   : > { %1974 = vmatpush1.bf16.msra.mxu0 %v2826_v49  ;;  %v2922_v49 = vld [vmem:[%s3337_s12 + $0x10c] ss:$16 sps:$4 sm:$0xff]  }
  0xb9   : > { %2015 = vmatpush1.bf16.msra.mxu1 %v2829_v50  ;;  %1975 = vmatprep.subr.bf16.mxu0 %v2834_v52  ;;  %v2925_v50 = vld [vmem:[%s3337_s12 + $0x30c] ss:$16 sps:$4 sm:$0xff]   ;;  %v2920_v52 = vld [vmem:[%s3337_s12 + $0x108] ss:$16 sps:$4 sm:$0xff]  }
  0xba   : > { %2016 = vmatprep.subr.bf16.mxu1 %v2837_v53  ;;  %v2923_v53 = vld [vmem:[%s3337_s12 + $0x308] ss:$16 sps:$4 sm:$0xff]  }
  0xbc   : > { %1976 = vmatpush1.bf16.msra.mxu0 %v2832_v54  ;;  %v2928_v54 = vld [vmem:[%s3337_s12 + $0x12c] ss:$16 sps:$4 sm:$0xff]  }
  0xbd   : > { %2017 = vmatpush1.bf16.msra.mxu1 %v2835_v55  ;;  %1977 = vmatprep.subr.bf16.mxu0 %v2840_v56  ;;  %v2931_v55 = vld [vmem:[%s3337_s12 + $0x32c] ss:$16 sps:$4 sm:$0xff]   ;;  %v2926_v56 = vld [vmem:[%s3337_s12 + $0x128] ss:$16 sps:$4 sm:$0xff]  }
  0xbe   : > { %2018 = vmatprep.subr.bf16.mxu1 %v2843_v57  ;;  %v2929_v57 = vld [vmem:[%s3337_s12 + $0x328] ss:$16 sps:$4 sm:$0xff]  }
  0xc0   : > { %1978 = vmatpush1.bf16.msra.mxu0 %v2838_v58  ;;  %v2934_v58 = vld [vmem:[%s3337_s12 + $0x14c] ss:$16 sps:$4 sm:$0xff]  }
  0xc1   : > { %2019 = vmatpush1.bf16.msra.mxu1 %v2841_v59  ;;  %1979 = vmatprep.subr.bf16.mxu0 %v2846_v60  ;;  %v2937_v59 = vld [vmem:[%s3337_s12 + $0x34c] ss:$16 sps:$4 sm:$0xff]   ;;  %v2932_v60 = vld [vmem:[%s3337_s12 + $0x148] ss:$16 sps:$4 sm:$0xff]  }
  0xc2   : > { %2020 = vmatprep.subr.bf16.mxu1 %v2849_v61  ;;  %v2935_v61 = vld [vmem:[%s3337_s12 + $0x348] ss:$16 sps:$4 sm:$0xff]  }
  0xc4   : > { %1980 = vmatpush1.bf16.msra.mxu0 %v2844_v62  ;;  %v2940_v62 = vld [vmem:[%s3337_s12 + $0x16c] ss:$16 sps:$4 sm:$0xff]  }
  0xc5   : > { %2021 = vmatpush1.bf16.msra.mxu1 %v2847_v63  ;;  %1981 = vmatprep.subr.bf16.mxu0 %v2852_v0  ;;  %v2943_v63 = vld [vmem:[%s3337_s12 + $0x36c] ss:$16 sps:$4 sm:$0xff]   ;;  %v2938_v0 = vld [vmem:[%s3337_s12 + $0x168] ss:$16 sps:$4 sm:$0xff]  }
  0xc6   : > { %2022 = vmatprep.subr.bf16.mxu1 %v2855_v1  ;;  %v2941_v1 = vld [vmem:[%s3337_s12 + $0x368] ss:$16 sps:$4 sm:$0xff]  }
  0xc8   : > { %1982 = vmatpush1.bf16.msra.mxu0 %v2850_v2  ;;  %v2946_v2 = vld [vmem:[%s3337_s12 + $0x18c] ss:$16 sps:$4 sm:$0xff]  }
  0xc9   : > { %2023 = vmatpush1.bf16.msra.mxu1 %v2853_v3  ;;  %1983 = vmatprep.subr.bf16.mxu0 %v2858_v4  ;;  %v2949_v3 = vld [vmem:[%s3337_s12 + $0x38c] ss:$16 sps:$4 sm:$0xff]   ;;  %v2944_v4 = vld [vmem:[%s3337_s12 + $0x188] ss:$16 sps:$4 sm:$0xff]  }
  0xca   : > { %2024 = vmatprep.subr.bf16.mxu1 %v2861_v5  ;;  %v2947_v5 = vld [vmem:[%s3337_s12 + $0x388] ss:$16 sps:$4 sm:$0xff]  }
  0xcc   : > { %1984 = vmatpush1.bf16.msra.mxu0 %v2856_v8  ;;  %v2952_v8 = vld [vmem:[%s3337_s12 + $0x1ac] ss:$16 sps:$4 sm:$0xff]  }
  0xcd   : > { %2025 = vmatpush1.bf16.msra.mxu1 %v2859_v9  ;;  %1985 = vmatprep.subr.bf16.mxu0 %v2864_v10  ;;  %v2955_v9 = vld [vmem:[%s3337_s12 + $0x3ac] ss:$16 sps:$4 sm:$0xff]   ;;  %v2950_v10 = vld [vmem:[%s3337_s12 + $0x1a8] ss:$16 sps:$4 sm:$0xff]  }
  0xce   : > { %2026 = vmatprep.subr.bf16.mxu1 %v2867_v11  ;;  %v2953_v11 = vld [vmem:[%s3337_s12 + $0x3a8] ss:$16 sps:$4 sm:$0xff]  }
  0xd0   : > { %1986 = vmatpush1.bf16.msra.mxu0 %v2862_v12  ;;  %v2958_v12 = vld [vmem:[%s3337_s12 + $0x1cc] ss:$16 sps:$4 sm:$0xff]  }
  0xd1   : > { %2027 = vmatpush1.bf16.msra.mxu1 %v2865_v13  ;;  %2037 = vmatprep.subr.bf16.mxu0 %v2874_v14  ;;  %v2961_v13 = vld [vmem:[%s3337_s12 + $0x3cc] ss:$16 sps:$4 sm:$0xff]   ;;  %v2956_v14 = vld [vmem:[%s3337_s12 + $0x1c8] ss:$16 sps:$4 sm:$0xff]  }
  0xd2   : > { %2078 = vmatprep.subr.bf16.mxu1 %v2877_v15  ;;  %v2959_v15 = vld [vmem:[%s3337_s12 + $0x3c8] ss:$16 sps:$4 sm:$0xff]  }
  0xd3   : > { %1988 = vmatmul.mubr.bf16.vlgmr.msra.gmra.mrb[4].mxu0 %v3519_v16 }
  0xd4   : > { %2029 = vmatmul.mubr.bf16.vlgmr.msra.gmra.mrb[4].mxu1 %v3523_v17  ;;  %2038 = vmatpush1.bf16.msra.mxu0 %v2872_v18  ;;  %v2964_v18 = vld [vmem:[%s3337_s12 + $0x1ec] ss:$16 sps:$4 sm:$0xff]  }
  0xd5   : > { %2079 = vmatpush1.bf16.msra.mxu1 %v2875_v19  ;;  %2039 = vmatprep.subr.bf16.mxu0 %v2880_v20  ;;  %v2967_v19 = vld [vmem:[%s3337_s12 + $0x3ec] ss:$16 sps:$4 sm:$0xff]   ;;  %v2962_v20 = vld [vmem:[%s3337_s12 + $0x1e8] ss:$16 sps:$4 sm:$0xff]  }
  0xd6   : > { %2080 = vmatprep.subr.bf16.mxu1 %v2883_v21  ;;  %2069 = vmatprep.mubr.bf16.mxu0 %v3398_v47  ;;  %v2898_v47 = vld [vmem:[%s3337_s12 + $0x8c] ss:$16 sps:$4 sm:$0xff]   ;;  %v2965_v21 = vld [vmem:[%s3337_s12 + $0x3e8] ss:$16 sps:$4 sm:$0xff]  }
  0xd7   : > { %2110 = vmatprep.mubr.bf16.mxu1 %v3405_v51  ;;  %v2901_v51 = vld [vmem:[%s3337_s12 + $0x28c] ss:$16 sps:$4 sm:$0xff]  }
  0xd8   : > { %2040 = vmatpush1.bf16.msra.mxu0 %v2878_v22  ;;  %v2970_v22 = vld [vmem:[%s3337_s12 + $0x40c] ss:$16 sps:$4 sm:$0xff]  }
  0xd9   : > { %2081 = vmatpush1.bf16.msra.mxu1 %v2881_v23  ;;  %2041 = vmatprep.subr.bf16.mxu0 %v2886_v24  ;;  %v2973_v23 = vld [vmem:[%s3337_s12 + $0x60c] ss:$16 sps:$4 sm:$0xff]   ;;  %v2968_v24 = vld [vmem:[%s3337_s12 + $0x408] ss:$16 sps:$4 sm:$0xff]  }
  0xda   : > { %2082 = vmatprep.subr.bf16.mxu1 %v2889_v25  ;;  %v2971_v25 = vld [vmem:[%s3337_s12 + $0x608] ss:$16 sps:$4 sm:$0xff]  }
  0xdc   : > { %2042 = vmatpush1.bf16.msra.mxu0 %v2884_v26  ;;  %v2976_v26 = vld [vmem:[%s3337_s12 + $0x42c] ss:$16 sps:$4 sm:$0xff]  }
  0xdd   : > { %2083 = vmatpush1.bf16.msra.mxu1 %v2887_v27  ;;  %2043 = vmatprep.subr.bf16.mxu0 %v2892_v28  ;;  %v2979_v27 = vld [vmem:[%s3337_s12 + $0x62c] ss:$16 sps:$4 sm:$0xff]   ;;  %v2974_v28 = vld [vmem:[%s3337_s12 + $0x428] ss:$16 sps:$4 sm:$0xff]  }
  0xde   : > { %2084 = vmatprep.subr.bf16.mxu1 %v2895_v29  ;;  %v2977_v29 = vld [vmem:[%s3337_s12 + $0x628] ss:$16 sps:$4 sm:$0xff]  }
  0xe0   : > { %2044 = vmatpush1.bf16.msra.mxu0 %v2890_v30  ;;  %v2982_v30 = vld [vmem:[%s3337_s12 + $0x44c] ss:$16 sps:$4 sm:$0xff]  }
  0xe1   : > { %2085 = vmatpush1.bf16.msra.mxu1 %v2893_v31  ;;  %2045 = vmatprep.subr.bf16.mxu0 %v2898_v47  ;;  %v2985_v31 = vld [vmem:[%s3337_s12 + $0x64c] ss:$16 sps:$4 sm:$0xff]   ;;  %v277_v47 = vlaneseq }
  0xe2   : > { %2086 = vmatprep.subr.bf16.mxu1 %v2901_v51  ;;  %v2988_v51 = vld [vmem:[%s3337_s12 + $0x46c] ss:$16 sps:$4 sm:$0xff]  }
  0xe4   : > { %2046 = vmatpush1.bf16.msra.mxu0 %v2896_v32  ;;  %v2991_v32 = vld [vmem:[%s3337_s12 + $0x66c] ss:$16 sps:$4 sm:$0xff]  }
  0xe5   : > { %2087 = vmatpush1.bf16.msra.mxu1 %v2899_v33  ;;  %2047 = vmatprep.subr.bf16.mxu0 %v2904_v34  ;;  %v278_v33 = vshrl.u32 %v277_v47, 7  ;;  %v2986_v34 = vld [vmem:[%s3337_s12 + $0x468] ss:$16 sps:$4 sm:$0xff]  }
  0xe6   : > { %2088 = vmatprep.subr.bf16.mxu1 %v2907_v35  ;;  %v3061_v47 = vld [vmem:[%s3337_s12 + $0x7e8] ss:$16 sps:$4 sm:$0xff]  }
  0xe7   : > { %v279_v35 = vsub.s32 0, %v278_v33 }
  0xe8   : > { %2048 = vmatpush1.bf16.msra.mxu0 %v2902_v38  ;;  %v2997_v38 = vld [vmem:[%s3337_s12 + $0x68c] ss:$16 sps:$4 sm:$0xff]  }
  0xe9   : > { %2089 = vmatpush1.bf16.msra.mxu1 %v2905_v39  ;;  %2049 = vmatprep.subr.bf16.mxu0 %v2910_v40  ;;  %v275_v39 = vld [vmem:[%s3343_s7] sm:$0xf]  ;;  %v283_v40 = vsub.s32 1, %v278_v33 }
  0xea   : > { %2090 = vmatprep.subr.bf16.mxu1 %v2913_v41  ;;  %v280_v41 = vrot.slane %v275_v39, %v279_v35 }
  0xec   : > { %2050 = vmatpush1.bf16.msra.mxu0 %v2908_v42  ;;  %v287_v42 = vsub.s32 2, %v278_v33  ;;  %297 = vst [vmem:[%s3618_s28] sm:$0xff] %v280_v41 }
  0xed   : > { %2091 = vmatpush1.bf16.msra.mxu1 %v2911_v43  ;;  %2051 = vmatprep.subr.bf16.mxu0 %v2916_v44  ;;  %v284_v43 = vrot.slane %v275_v39, %v283_v40  ;;  %v291_v44 = vsub.s32 3, %v278_v33 }
  0xee   : > { %2092 = vmatprep.subr.bf16.mxu1 %v2919_v45  ;;  %v2992_v45 = vld [vmem:[%s3337_s12 + $0x488] ss:$16 sps:$4 sm:$0xff]  }
  0xef   : > { %298 = vst [vmem:[%s3618_s28 + $0x8] sm:$0xff] %v284_v43 }
  0xf0   : > { %2052 = vmatpush1.bf16.msra.mxu0 %v2914_v46  ;;  %v2995_v46 = vld [vmem:[%s3337_s12 + $0x688] ss:$16 sps:$4 sm:$0xff]  }
  0xf1   : > { %2093 = vmatpush1.bf16.msra.mxu1 %v2917_v48  ;;  %2053 = vmatprep.subr.bf16.mxu0 %v2922_v49  ;;  %v288_v48 = vrot.slane %v275_v39, %v287_v42  ;;  %v3000_v49 = vld [vmem:[%s3337_s12 + $0x4ac] ss:$16 sps:$4 sm:$0xff]  }
  0xf2   : > { %2094 = vmatprep.subr.bf16.mxu1 %v2925_v50  ;;  %v3003_v50 = vld [vmem:[%s3337_s12 + $0x6ac] ss:$16 sps:$4 sm:$0xff]  }
  0xf3   : > { %299 = vst [vmem:[%s3618_s28 + $0x10] sm:$0xff] %v288_v48 }
  0xf4   : > { %2054 = vmatpush1.bf16.msra.mxu0 %v2920_v52  ;;  %v3625_v52 = vrot.slane %v275_v39, %v291_v44  ;;  %v301_v44 = vld [vmem:[%s3618_s28] sm:$0xff] }
  0xf5   : > { %2095 = vmatpush1.bf16.msra.mxu1 %v2923_v53  ;;  %2055 = vmatprep.subr.bf16.mxu0 %v2928_v54  ;;  %v2998_v53 = vld [vmem:[%s3337_s12 + $0x4a8] ss:$16 sps:$4 sm:$0xff]  }
  0xf6   : > { %2096 = vmatprep.subr.bf16.mxu1 %v2931_v55  ;;  %300 = vst [vmem:[%s3618_s28 + $0x18] sm:$0xff] %v3625_v52  ;;  %v3001_v54 = vld [vmem:[%s3337_s12 + $0x6a8] ss:$16 sps:$4 sm:$0xff]   ;;  %v3006_v55 = vld [vmem:[%s3337_s12 + $0x4cc] ss:$16 sps:$4 sm:$0xff]  }
  0xf8   : > { %2056 = vmatpush1.bf16.msra.mxu0 %v2926_v56  ;;  %v3009_v56 = vld [vmem:[%s3337_s12 + $0x6cc] ss:$16 sps:$4 sm:$0xff]  }
  0xf9   : > { %2097 = vmatpush1.bf16.msra.mxu1 %v2929_v57  ;;  %2057 = vmatprep.subr.bf16.mxu0 %v2934_v58  ;;  %v3004_v57 = vld [vmem:[%s3337_s12 + $0x4c8] ss:$16 sps:$4 sm:$0xff]  }
  0xfa   : > { %2098 = vmatprep.subr.bf16.mxu1 %v2937_v59  ;;  %v3007_v58 = vld [vmem:[%s3337_s12 + $0x6c8] ss:$16 sps:$4 sm:$0xff]   ;;  %v3012_v59 = vld [vmem:[%s3337_s12 + $0x4ec] ss:$16 sps:$4 sm:$0xff]  }
  0xfc   : > { %2058 = vmatpush1.bf16.msra.mxu0 %v2932_v60  ;;  %v3015_v60 = vld [vmem:[%s3337_s12 + $0x6ec] ss:$16 sps:$4 sm:$0xff]  }
  0xfd   : > { %2099 = vmatpush1.bf16.msra.mxu1 %v2935_v61  ;;  %2059 = vmatprep.subr.bf16.mxu0 %v2940_v62  ;;  %v3010_v61 = vld [vmem:[%s3337_s12 + $0x4e8] ss:$16 sps:$4 sm:$0xff]  }
  0xfe   : > { %2100 = vmatprep.subr.bf16.mxu1 %v2943_v63  ;;  %v3013_v62 = vld [vmem:[%s3337_s12 + $0x6e8] ss:$16 sps:$4 sm:$0xff]   ;;  %v3018_v63 = vld [vmem:[%s3337_s12 + $0x50c] ss:$16 sps:$4 sm:$0xff]  }
 0x100   : > { %2060 = vmatpush1.bf16.msra.mxu0 %v2938_v0  ;;  %v3021_v0 = vld [vmem:[%s3337_s12 + $0x70c] ss:$16 sps:$4 sm:$0xff]  }
 0x101   : > { %2101 = vmatpush1.bf16.msra.mxu1 %v2941_v1  ;;  %2061 = vmatprep.subr.bf16.mxu0 %v2946_v2  ;;  %v3016_v1 = vld [vmem:[%s3337_s12 + $0x508] ss:$16 sps:$4 sm:$0xff]  }
 0x102   : > { %2102 = vmatprep.subr.bf16.mxu1 %v2949_v3  ;;  %v3019_v2 = vld [vmem:[%s3337_s12 + $0x708] ss:$16 sps:$4 sm:$0xff]   ;;  %v3024_v3 = vld [vmem:[%s3337_s12 + $0x52c] ss:$16 sps:$4 sm:$0xff]  }
 0x104   : > { %2062 = vmatpush1.bf16.msra.mxu0 %v2944_v4  ;;  %v3027_v4 = vld [vmem:[%s3337_s12 + $0x72c] ss:$16 sps:$4 sm:$0xff]  }
 0x105   : > { %2103 = vmatpush1.bf16.msra.mxu1 %v2947_v5  ;;  %2063 = vmatprep.subr.bf16.mxu0 %v2952_v8  ;;  %v3022_v5 = vld [vmem:[%s3337_s12 + $0x528] ss:$16 sps:$4 sm:$0xff]  }
 0x106   : > { %2104 = vmatprep.subr.bf16.mxu1 %v2955_v9  ;;  %v3025_v8 = vld [vmem:[%s3337_s12 + $0x728] ss:$16 sps:$4 sm:$0xff]   ;;  %v3030_v9 = vld [vmem:[%s3337_s12 + $0x54c] ss:$16 sps:$4 sm:$0xff]  }
 0x108   : > { %2064 = vmatpush1.bf16.msra.mxu0 %v2950_v10  ;;  %v3033_v10 = vld [vmem:[%s3337_s12 + $0x74c] ss:$16 sps:$4 sm:$0xff]  }
 0x109   : > { %2105 = vmatpush1.bf16.msra.mxu1 %v2953_v11  ;;  %2065 = vmatprep.subr.bf16.mxu0 %v2958_v12  ;;  %v3028_v11 = vld [vmem:[%s3337_s12 + $0x548] ss:$16 sps:$4 sm:$0xff]  }
 0x10a   : > { %2106 = vmatprep.subr.bf16.mxu1 %v2961_v13  ;;  %v3031_v12 = vld [vmem:[%s3337_s12 + $0x748] ss:$16 sps:$4 sm:$0xff]   ;;  %v3036_v13 = vld [vmem:[%s3337_s12 + $0x56c] ss:$16 sps:$4 sm:$0xff]  }
 0x10c   : > { %2066 = vmatpush1.bf16.msra.mxu0 %v2956_v14  ;;  %v3039_v14 = vld [vmem:[%s3337_s12 + $0x76c] ss:$16 sps:$4 sm:$0xff]  }
 0x10d   : > { %2107 = vmatpush1.bf16.msra.mxu1 %v2959_v15  ;;  %2067 = vmatprep.subr.bf16.mxu0 %v2964_v18  ;;  %v3034_v15 = vld [vmem:[%s3337_s12 + $0x568] ss:$16 sps:$4 sm:$0xff]  }
 0x10e   : > { %2108 = vmatprep.subr.bf16.mxu1 %v2967_v19  ;;  %v3037_v18 = vld [vmem:[%s3337_s12 + $0x768] ss:$16 sps:$4 sm:$0xff]   ;;  %v3042_v19 = vld [vmem:[%s3337_s12 + $0x58c] ss:$16 sps:$4 sm:$0xff]  }
 0x110   : > { %2068 = vmatpush1.bf16.msra.mxu0 %v2962_v20  ;;  %v3045_v20 = vld [vmem:[%s3337_s12 + $0x78c] ss:$16 sps:$4 sm:$0xff]  }
 0x111   : > { %2109 = vmatpush1.bf16.msra.mxu1 %v2965_v21  ;;  %2119 = vmatprep.subr.bf16.mxu0 %v2970_v22  ;;  %v3040_v21 = vld [vmem:[%s3337_s12 + $0x588] ss:$16 sps:$4 sm:$0xff]  }
 0x112   : > { %2160 = vmatprep.subr.bf16.mxu1 %v2973_v23  ;;  %v3043_v22 = vld [vmem:[%s3337_s12 + $0x788] ss:$16 sps:$4 sm:$0xff]   ;;  %v3048_v23 = vld [vmem:[%s3337_s12 + $0x5ac] ss:$16 sps:$4 sm:$0xff]  }
 0x113   : > { %2070 = vmatmul.mubr.bf16.vlgmr.msra.gmra.mrb[8].mxu0 %v3427_v6  ;;  %v2980_v6 = vld [vmem:[%s3337_s12 + $0x448] ss:$16 sps:$4 sm:$0xff]  }
 0x114   : > { %2111 = vmatmul.mubr.bf16.vlgmr.msra.gmra.mrb[8].mxu1 %v3429_v7  ;;  %2120 = vmatpush1.bf16.msra.mxu0 %v2968_v24  ;;  %v2983_v7 = vld [vmem:[%s3337_s12 + $0x648] ss:$16 sps:$4 sm:$0xff]   ;;  %v3051_v24 = vld [vmem:[%s3337_s12 + $0x7ac] ss:$16 sps:$4 sm:$0xff]  }
 0x115   : > { %2161 = vmatpush1.bf16.msra.mxu1 %v2971_v25  ;;  %2121 = vmatprep.subr.bf16.mxu0 %v2976_v26  ;;  %v3046_v25 = vld [vmem:[%s3337_s12 + $0x5a8] ss:$16 sps:$4 sm:$0xff]  }
 0x116   : > { %2162 = vmatprep.subr.bf16.mxu1 %v2979_v27  ;;  %2151 = vmatprep.mubr.bf16.mxu0 %v3471_v36  ;;  %v2989_v36 = vld [vmem:[%s3337_s12 + $0x668] ss:$16 sps:$4 sm:$0xff]   ;;  %v3054_v27 = vld [vmem:[%s3337_s12 + $0x5cc] ss:$16 sps:$4 sm:$0xff]  }
 0x117   : > { %2192 = vmatprep.mubr.bf16.mxu1 %v3475_v37  ;;  %v2994_v37 = vld [vmem:[%s3337_s12 + $0x48c] ss:$16 sps:$4 sm:$0xff]   ;;  %v3049_v26 = vld [vmem:[%s3337_s12 + $0x7a8] ss:$16 sps:$4 sm:$0xff]  }
 0x118   : > { %2122 = vmatpush1.bf16.msra.mxu0 %v2974_v28  ;;  %v3057_v28 = vld [vmem:[%s3337_s12 + $0x7cc] ss:$16 sps:$4 sm:$0xff]  }
 0x119   : > { %2163 = vmatpush1.bf16.msra.mxu1 %v2977_v29  ;;  %2123 = vmatprep.subr.bf16.mxu0 %v2982_v30  ;;  %v3052_v29 = vld [vmem:[%s3337_s12 + $0x5c8] ss:$16 sps:$4 sm:$0xff]  }
 0x11a   : > { %2164 = vmatprep.subr.bf16.mxu1 %v2985_v31  ;;  %v3055_v30 = vld [vmem:[%s3337_s12 + $0x7c8] ss:$16 sps:$4 sm:$0xff]   ;;  %v3060_v31 = vld [vmem:[%s3337_s12 + $0x5ec] ss:$16 sps:$4 sm:$0xff]  }
 0x11c   : > { %2124 = vmatpush1.bf16.msra.mxu0 %v2980_v6  ;;  %v3063_v6 = vld [vmem:[%s3337_s12 + $0x7ec] ss:$16 sps:$4 sm:$0xff]  }
 0x11d   : > { %2165 = vmatpush1.bf16.msra.mxu1 %v2983_v7  ;;  %2125 = vmatprep.subr.bf16.mxu0 %v2988_v51  ;;  %v3058_v7 = vld [vmem:[%s3337_s12 + $0x5e8] ss:$16 sps:$4 sm:$0xff]  }
 0x11e   : > { %2166 = vmatprep.subr.bf16.mxu1 %v2991_v32 }
 0x120   : > { %2126 = vmatpush1.bf16.msra.mxu0 %v2986_v34 }
 0x121   : > { %2167 = vmatpush1.bf16.msra.mxu1 %v2989_v36  ;;  %2127 = vmatprep.subr.bf16.mxu0 %v2994_v37 }
 0x122   : > { %2168 = vmatprep.subr.bf16.mxu1 %v2997_v38 }
 0x124   : > { %2128 = vmatpush1.bf16.msra.mxu0 %v2992_v45 }
 0x125   : > { %2169 = vmatpush1.bf16.msra.mxu1 %v2995_v46  ;;  %2129 = vmatprep.subr.bf16.mxu0 %v3000_v49 }
 0x126   : > { %2170 = vmatprep.subr.bf16.mxu1 %v3003_v50  ;;  %v302_v50 = vld [vmem:[%s3618_s28 + $0x8] sm:$0xff] }
 0x128   : > { %2130 = vmatpush1.bf16.msra.mxu0 %v2998_v53 }
 0x129   : > { %2171 = vmatpush1.bf16.msra.mxu1 %v3001_v54  ;;  %2131 = vmatprep.subr.bf16.mxu0 %v3006_v55 }
 0x12a   : > { %2172 = vmatprep.subr.bf16.mxu1 %v3009_v56  ;;  %v303_v56 = vld [vmem:[%s3618_s28 + $0x10] sm:$0xff] }
 0x12c   : > { %2132 = vmatpush1.bf16.msra.mxu0 %v3004_v57 }
 0x12d   : > { %2173 = vmatpush1.bf16.msra.mxu1 %v3007_v58  ;;  %2133 = vmatprep.subr.bf16.mxu0 %v3012_v59 }
 0x12e   : > { %2174 = vmatprep.subr.bf16.mxu1 %v3015_v60 }
 0x130   : > { %2134 = vmatpush1.bf16.msra.mxu0 %v3010_v61 }
 0x131   : > { %2175 = vmatpush1.bf16.msra.mxu1 %v3013_v62  ;;  %2135 = vmatprep.subr.bf16.mxu0 %v3018_v63 }
 0x132   : > { %2176 = vmatprep.subr.bf16.mxu1 %v3021_v0 }
 0x134   : > { %2136 = vmatpush1.bf16.msra.mxu0 %v3016_v1 }
 0x135   : > { %2177 = vmatpush1.bf16.msra.mxu1 %v3019_v2  ;;  %2137 = vmatprep.subr.bf16.mxu0 %v3024_v3 }
 0x136   : > { %2178 = vmatprep.subr.bf16.mxu1 %v3027_v4 }
 0x138   : > { %2138 = vmatpush1.bf16.msra.mxu0 %v3022_v5 }
 0x139   : > { %2179 = vmatpush1.bf16.msra.mxu1 %v3025_v8  ;;  %2139 = vmatprep.subr.bf16.mxu0 %v3030_v9 }
 0x13a   : > { %2180 = vmatprep.subr.bf16.mxu1 %v3033_v10 }
 0x13c   : > { %2140 = vmatpush1.bf16.msra.mxu0 %v3028_v11 }
 0x13d   : > { %2181 = vmatpush1.bf16.msra.mxu1 %v3031_v12  ;;  %2141 = vmatprep.subr.bf16.mxu0 %v3036_v13 }
 0x13e   : > { %2182 = vmatprep.subr.bf16.mxu1 %v3039_v14 }
 0x140   : > { %2142 = vmatpush1.bf16.msra.mxu0 %v3034_v15 }
 0x141   : > { %2183 = vmatpush1.bf16.msra.mxu1 %v3037_v18  ;;  %2143 = vmatprep.subr.bf16.mxu0 %v3042_v19 }
 0x142   : > { %2184 = vmatprep.subr.bf16.mxu1 %v3045_v20 }
 0x144   : > { %2144 = vmatpush1.bf16.msra.mxu0 %v3040_v21 }
 0x145   : > { %2185 = vmatpush1.bf16.msra.mxu1 %v3043_v22  ;;  %2145 = vmatprep.subr.bf16.mxu0 %v3048_v23 }
 0x146   : > { %2186 = vmatprep.subr.bf16.mxu1 %v3051_v24 }
 0x148   : > { %2146 = vmatpush1.bf16.msra.mxu0 %v3046_v25 }
 0x149   : > { %2187 = vmatpush1.bf16.msra.mxu1 %v3049_v26  ;;  %2147 = vmatprep.subr.bf16.mxu0 %v3054_v27 }
 0x14a   : > { %2188 = vmatprep.subr.bf16.mxu1 %v3057_v28 }
 0x14c   : > { %2148 = vmatpush1.bf16.msra.mxu0 %v3052_v29 }
 0x14d   : > { %2189 = vmatpush1.bf16.msra.mxu1 %v3055_v30  ;;  %2149 = vmatprep.subr.bf16.mxu0 %v3060_v31 }
 0x14e   : > { %2190 = vmatprep.subr.bf16.mxu1 %v3063_v6 }
 0x150   : > { %2150 = vmatpush1.bf16.msra.mxu0 %v3058_v7 }
 0x151   : > { %2191 = vmatpush1.bf16.msra.mxu1 %v3061_v47 }
 0x153   : > { %2152 = vmatmul.mubr.bf16.vlgmr.msra.gmra.mrb[12].mxu0 %v3519_v16 }
 0x154   : > { %2193 = vmatmul.mubr.bf16.vlgmr.msra.gmra.mrb[12].mxu1 %v3523_v17 }
 0x166   : > { %v1907_v51 = vpop.f32.mrb[0].mxu0 }
 0x167   : > { %v1948_v32 = vpop.f32.mrb[0].mxu1  ;;  %v1909_v34 = vpop.f32.mrb[1].mxu0 }
 0x168   : > { %v1949_v33 = vadd.f32 %v1948_v32, %v1907_v51  ;;  %v1950_v36 = vpop.f32.mrb[1].mxu1  ;;  %v1911_v35 = vpop.f32.mrb[2].mxu0 }
 0x169   : > { %v1951_v37 = vadd.f32 %v1950_v36, %v1909_v34  ;;  %v1952_v38 = vpop.f32.mrb[2].mxu1  ;;  %v1912_v39 = vpop.f32.mrb[3].mxu0 }
 0x16a   : > { %v1953_v40 = vpop.f32.mrb[3].mxu1 }
 0x1a6   : > { %v1989_v41 = vpop.f32.mrb[4].mxu0 }
 0x1a7   : > { %v2030_v42 = vpop.f32.mrb[4].mxu1  ;;  %v1990_v43 = vadd.f32 %v1989_v41, %v1949_v33  ;;  %v1991_v16 = vpop.f32.mrb[5].mxu0 }
 0x1a8   : > { %v2032_v17 = vpop.f32.mrb[5].mxu1  ;;  %v1992_v45 = vadd.f32 %v1991_v16, %v1951_v37  ;;  %v1993_v46 = vpop.f32.mrb[6].mxu0 }
 0x1a9   : > { %v2034_v48 = vpop.f32.mrb[6].mxu1  ;;  %v2031_v49 = vadd.f32 %v2030_v42, %v1990_v43  ;;  %v1994_v53 = vpop.f32.mrb[7].mxu0 }
 0x1aa   : > { %v2035_v54 = vpop.f32.mrb[7].mxu1  ;;  %v2033_v55 = vadd.f32 %v2032_v17, %v1992_v45 }
 0x1ab   : > { %v2201_v57 = vadd.f32 %v2031_v49, %v301_v44 }
 0x1ac   : > { %v2202_v58 = vadd.f32 %v2033_v55, %v302_v50 }
 0x1ad   : > { %2205 = vst [vmem:[%s3618_s28] sm:$0xff] %v2201_v57 }
 0x1ae   : > { %2206 = vst [vmem:[%s3618_s28 + $0x8] sm:$0xff] %v2202_v58 }
 0x1e6   : > { %v2071_v59 = vpop.f32.mrb[8].mxu0 }
 0x1e7   : > { %v2112_v60 = vpop.f32.mrb[8].mxu1  ;;  %v2073_v62 = vpop.f32.mrb[9].mxu0 }
 0x1e8   : > { %v2113_v61 = vadd.f32 %v2112_v60, %v2071_v59  ;;  %v2114_v63 = vpop.f32.mrb[9].mxu1  ;;  %v2075_v1 = vpop.f32.mrb[10].mxu0 }
 0x1e9   : > { %v2115_v0 = vadd.f32 %v2114_v63, %v2073_v62  ;;  %v2116_v2 = vpop.f32.mrb[10].mxu1  ;;  %v2076_v3 = vpop.f32.mrb[11].mxu0 }
 0x1ea   : > { %v2117_v4 = vpop.f32.mrb[11].mxu1 }
 0x226   : > { %v2153_v5 = vpop.f32.mrb[12].mxu0 }
 0x227   : > { %v2194_v8 = vpop.f32.mrb[12].mxu1  ;;  %v2154_v9 = vadd.f32 %v2153_v5, %v2113_v61  ;;  %v2155_v10 = vpop.f32.mrb[13].mxu0 }
 0x228   : > { %v2196_v11 = vpop.f32.mrb[13].mxu1  ;;  %v2156_v12 = vadd.f32 %v2155_v10, %v2115_v0  ;;  %v2157_v13 = vpop.f32.mrb[14].mxu0 }
 0x229   : > { %v2198_v14 = vpop.f32.mrb[14].mxu1  ;;  %v2195_v15 = vadd.f32 %v2194_v8, %v2154_v9  ;;  %v2158_v18 = vpop.f32.mrb[15].mxu0 }
 0x22a   : > { %v2199_v19 = vpop.f32.mrb[15].mxu1  ;;  %v2197_v20 = vadd.f32 %v2196_v11, %v2156_v12 }
 0x22b   : > { %v2203_v21 = vadd.f32 %v2195_v15, %v303_v56 }
 0x22c   : > { %v2204_v22 = vadd.f32 %v2197_v20, %v3625_v52 }
 0x22d   : > { %2207 = vst [vmem:[%s3618_s28 + $0x10] sm:$0xff] %v2203_v21 }
 0x22e   : > { %2208 = vst [vmem:[%s3618_s28 + $0x18] sm:$0xff] %v2204_v22 }
 0x22f PF: > { %s19_s17 = sadd.s32 1, %s3178_s17   ;;  %s3712_s12 = smov %s3162_s13 }
 0x230   : > { %p16_p9 = scmp.ge.s32.totalorder %s19_s17, 4   ;;  %s3713_s13 = smov %s3166_s14 }
 0x231   : > { %s3714_s14 = smov %s3253_s24  ;;  %s3715_s15 = smov %s3174_s16 }
 0x232   : > { %s3716_s16 = smov %s3718_s19  ;;  %18 = sbr.rel (!%p16_p9) target bundleno = 6 (0x6), region = 92 }
 0x239   :  { %2231 = vsyncpa [#allocation3], 1 }
 0x23a   :  { %2233 = vsyncpa [#allocation3 + $0x1], 1 }
 0x23b   :  { %2234 = vsyncpa [#allocation5], 1 }
 0x23c   :  { %2236 = vsyncpa [#allocation5 + $0x1], 1 }

</bundles_post_ra>
